<compile_context>
chip_gen: v5e
topology: v5e:2x2
jax: 0.10.0
libtpu: 0.0.40
codegen_flags: <defaults>
</compile_context>

<pallas_src>
import functools
import math

import jax
import jax.numpy as jnp
from jax import lax
from jax.experimental import pallas as pl
from jax.experimental.pallas import tpu as pltpu


_LANES = 512            # lane-dense last dim (multiple of 128)
_MAX_TILE_ROWS = 1024   # 1024 x 512 x 4B = 2 MiB per f32 tile (fits v7x budget)


def _mix32(x):
    """lowbias32 integer hash: strong avalanche for sequential counters."""
    x = x ^ (x >> 16)
    x = x * jnp.uint32(0x7FEB352D)
    x = x ^ (x >> 15)
    x = x * jnp.uint32(0x846CA68B)
    x = x ^ (x >> 16)
    return x


def _uniform_from_bits(bits):
    """32 random bits -> float32 in [1, 2) via mantissa trick (no int->float cvt)."""
    return lax.bitcast_convert_type((bits >> 9) | jnp.uint32(0x3F800000),
                                    jnp.float32)


def _add_gaussian_noise_kernel(seed_ref, x_ref, o_ref, *, mean, std):
    """out = x + Normal(mean, std); both Box-Muller outputs used (top/bottom rows)."""
    tile_r, lanes = x_ref.shape
    half = tile_r // 2          # static; tile_r is a multiple of 16

    # Unique per-element counters across the whole array (tile id folded in).
    pid = pl.program_id(0)
    row = lax.broadcasted_iota(jnp.int32, (half, lanes), 0)
    col = lax.broadcasted_iota(jnp.int32, (half, lanes), 1)
    ctr = (row * lanes + col + pid * (half * lanes)).astype(jnp.uint32)

    # Two 32-bit streams derived from (seed, counter).
    seed = seed_ref[0].astype(jnp.uint32)
    k1 = seed * jnp.uint32(0x9E3779B9) + jnp.uint32(0x85EBCA6B)
    k2 = seed * jnp.uint32(0xC2B2AE35) + jnp.uint32(0x27D4EB2F)
    h1 = _mix32(ctr ^ k1)
    h2 = _mix32(h1 ^ k2)

    # Uniforms: u1 in (0, 1] (safe for log), u2 in [0, 1).  Pure VALU.
    u1 = 2.0 - _uniform_from_bits(h1)
    u2 = _uniform_from_bits(h2) - 1.0

    # Box-Muller, using BOTH outputs -> one (log, sqrt) + (cos, sin) per 2 elems.
    r = jnp.sqrt(-2.0 * jnp.log(u1))
    theta = jnp.float32(2.0 * math.pi) * u2
    n1 = jnp.float32(mean) + jnp.float32(std) * (r * jnp.cos(theta))
    n2 = jnp.float32(mean) + jnp.float32(std) * (r * jnp.sin(theta))

    # f32 add, single cast at the store (matters for bf16 inputs).
    x_top = x_ref[pl.ds(0, half), :].astype(jnp.float32)
    x_bot = x_ref[pl.ds(half, half), :].astype(jnp.float32)
    o_ref[pl.ds(0, half), :] = (x_top + n1).astype(o_ref.dtype)
    o_ref[pl.ds(half, half), :] = (x_bot + n2).astype(o_ref.dtype)


def gaussian_noise(x, seed, *, mean=0.0, std=0.15):
    """x: arbitrary-shape array (e.g. NCHW).  Returns x + Normal(mean, std)."""
    orig_shape = x.shape
    total = 1
    for d in orig_shape:
        total *= d

    rows = pl.cdiv(total, _LANES)
    rows = ((rows + 15) // 16) * 16          # sublane-friendly, even halves
    padded = rows * _LANES
    tile_r = min(rows, _MAX_TILE_ROWS)       # multiple of 16, <= ~2 MiB / tile
    grid_r = pl.cdiv(rows, tile_r)           # trailing partial block is masked

    x_flat = x.reshape(-1)
    if padded != total:
        x_flat = jnp.pad(x_flat, (0, padded - total))
    x2 = x_flat.reshape(rows, _LANES)
    seed_arr = jnp.asarray([seed], dtype=jnp.int32)

    kernel = functools.partial(_add_gaussian_noise_kernel,
                               mean=float(mean), std=float(std))

    out2 = pl.pallas_call(
        kernel,
        out_shape=jax.ShapeDtypeStruct((rows, _LANES), x.dtype),
        grid_spec=pltpu.PrefetchScalarGridSpec(
            num_scalar_prefetch=1,                             # seed -> SMEM
            grid=(grid_r,),
            in_specs=[pl.BlockSpec((tile_r, _LANES), lambda i, seed: (i, 0))],
            out_specs=pl.BlockSpec((tile_r, _LANES), lambda i, seed: (i, 0)),
        ),
        compiler_params=pltpu.CompilerParams(
            dimension_semantics=("parallel",),   # megacore / v7x dual-TC sharding
            vmem_limit_bytes=32 * 1024 * 1024,   # 4 x 2 MiB buffers << limit
        ),
        # NOTE: input_output_aliases={1: 0} (x is operand 1 after the prefetch
        # seed) would let XLA reuse x's HBM buffer for the output; left off so
        # callers can still read x afterwards without forcing a copy.
    )(seed_arr, x2)

    out_flat = out2.reshape(-1)
    if padded != total:
        out_flat = out_flat[:total]
    return out_flat.reshape(orig_shape)


if __name__ == "__main__":
    key = jax.random.PRNGKey(0)
    B, C, H, W = 2, 4, 16, 16
    x = jax.random.normal(key, (B, C, H, W), dtype=jnp.float32)

    mean, std = 0.0, 0.15
    y = gaussian_noise(x, seed=1234, mean=mean, std=std)
    y = jax.block_until_ready(y)

    # Shape/dtype preserved; residual (the noise) has the requested moments.
    assert y.shape == x.shape and y.dtype == x.dtype
    noise = y - x
    emp_mean = float(jnp.mean(noise))
    emp_std = float(jnp.std(noise))
    assert abs(emp_mean - mean) < 0.05, emp_mean
    assert abs(emp_std - std) < 0.05, emp_std

    print("KERNEL_OK")
</pallas_src>

<mosaic_0001>
module attributes {stable_mosaic.version = 11 : i64} {
  func.func @_add_gaussian_noise_kernel(%arg0: i32, %arg1: memref<1xi32, #tpu.memory_space<smem>>, %arg2: memref<16x512xf32, #tpu.memory_space<vmem>>, %arg3: memref<16x512xf32, #tpu.memory_space<vmem>>) attributes {dimension_semantics = [#tpu.dimension_semantics<parallel>], iteration_bounds = array<i64: 1>, scalar_prefetch = 1 : i64, scratch_operands = 0 : i64, tpu.core_type = #tpu.core_type<tc>, window_params = [{transform_indices = @transform_0, window_bounds = array<i64: 16, 512>}, {transform_indices = @transform_1, window_bounds = array<i64: 16, 512>}]} {
    %0 = tpu.iota {dimensions = array<i32: 0>} : vector<8x512xi32>
    %1 = tpu.iota {dimensions = array<i32: 1>} : vector<8x512xi32>
    %c512_i32 = arith.constant 512 : i32
    %2 = vector.broadcast %c512_i32 : i32 to vector<8x512xi32>
    %3 = arith.muli %0, %2 : vector<8x512xi32>
    %4 = arith.addi %3, %1 : vector<8x512xi32>
    %c4096_i32 = arith.constant 4096 : i32
    %5 = arith.muli %arg0, %c4096_i32 : i32
    %6 = vector.broadcast %5 : i32 to vector<8x512xi32>
    %7 = arith.addi %4, %6 : vector<8x512xi32>
    %c0 = arith.constant 0 : index
    %8 = memref.load %arg1[%c0] : memref<1xi32, #tpu.memory_space<smem>>
    %c-1640531527_i32 = arith.constant -1640531527 : i32
    %9 = arith.muli %8, %c-1640531527_i32 : i32
    %c-2048144789_i32 = arith.constant -2048144789 : i32
    %10 = arith.addi %9, %c-2048144789_i32 : i32
    %c-1028477387_i32 = arith.constant -1028477387 : i32
    %11 = arith.muli %8, %c-1028477387_i32 : i32
    %c668265263_i32 = arith.constant 668265263 : i32
    %12 = arith.addi %11, %c668265263_i32 : i32
    %13 = vector.broadcast %10 : i32 to vector<8x512xi32>
    %14 = arith.xori %7, %13 : vector<8x512xi32>
    %c16_i32 = arith.constant 16 : i32
    %15 = vector.broadcast %c16_i32 : i32 to vector<8x512xi32>
    %16 = arith.shrui %14, %15 : vector<8x512xi32>
    %17 = arith.xori %14, %16 : vector<8x512xi32>
    %c2146121005_i32 = arith.constant 2146121005 : i32
    %18 = vector.broadcast %c2146121005_i32 : i32 to vector<8x512xi32>
    %19 = arith.muli %17, %18 : vector<8x512xi32>
    %c15_i32 = arith.constant 15 : i32
    %20 = vector.broadcast %c15_i32 : i32 to vector<8x512xi32>
    %21 = arith.shrui %19, %20 : vector<8x512xi32>
    %22 = arith.xori %19, %21 : vector<8x512xi32>
    %c-2073254261_i32 = arith.constant -2073254261 : i32
    %23 = vector.broadcast %c-2073254261_i32 : i32 to vector<8x512xi32>
    %24 = arith.muli %22, %23 : vector<8x512xi32>
    %c16_i32_0 = arith.constant 16 : i32
    %25 = vector.broadcast %c16_i32_0 : i32 to vector<8x512xi32>
    %26 = arith.shrui %24, %25 : vector<8x512xi32>
    %27 = arith.xori %24, %26 : vector<8x512xi32>
    %28 = vector.broadcast %12 : i32 to vector<8x512xi32>
    %29 = arith.xori %27, %28 : vector<8x512xi32>
    %c16_i32_1 = arith.constant 16 : i32
    %30 = vector.broadcast %c16_i32_1 : i32 to vector<8x512xi32>
    %31 = arith.shrui %29, %30 : vector<8x512xi32>
    %32 = arith.xori %29, %31 : vector<8x512xi32>
    %c2146121005_i32_2 = arith.constant 2146121005 : i32
    %33 = vector.broadcast %c2146121005_i32_2 : i32 to vector<8x512xi32>
    %34 = arith.muli %32, %33 : vector<8x512xi32>
    %c15_i32_3 = arith.constant 15 : i32
    %35 = vector.broadcast %c15_i32_3 : i32 to vector<8x512xi32>
    %36 = arith.shrui %34, %35 : vector<8x512xi32>
    %37 = arith.xori %34, %36 : vector<8x512xi32>
    %c-2073254261_i32_4 = arith.constant -2073254261 : i32
    %38 = vector.broadcast %c-2073254261_i32_4 : i32 to vector<8x512xi32>
    %39 = arith.muli %37, %38 : vector<8x512xi32>
    %c16_i32_5 = arith.constant 16 : i32
    %40 = vector.broadcast %c16_i32_5 : i32 to vector<8x512xi32>
    %41 = arith.shrui %39, %40 : vector<8x512xi32>
    %42 = arith.xori %39, %41 : vector<8x512xi32>
    %c9_i32 = arith.constant 9 : i32
    %43 = vector.broadcast %c9_i32 : i32 to vector<8x512xi32>
    %44 = arith.shrui %27, %43 : vector<8x512xi32>
    %c1065353216_i32 = arith.constant 1065353216 : i32
    %45 = vector.broadcast %c1065353216_i32 : i32 to vector<8x512xi32>
    %46 = arith.ori %44, %45 : vector<8x512xi32>
    %47 = tpu.bitcast %46 : vector<8x512xi32> -> vector<8x512xf32>
    %cst = arith.constant 2.000000e+00 : f32
    %48 = vector.broadcast %cst : f32 to vector<8x512xf32>
    %49 = arith.subf %48, %47 : vector<8x512xf32>
    %c9_i32_6 = arith.constant 9 : i32
    %50 = vector.broadcast %c9_i32_6 : i32 to vector<8x512xi32>
    %51 = arith.shrui %42, %50 : vector<8x512xi32>
    %c1065353216_i32_7 = arith.constant 1065353216 : i32
    %52 = vector.broadcast %c1065353216_i32_7 : i32 to vector<8x512xi32>
    %53 = arith.ori %51, %52 : vector<8x512xi32>
    %54 = tpu.bitcast %53 : vector<8x512xi32> -> vector<8x512xf32>
    %cst_8 = arith.constant 1.000000e+00 : f32
    %55 = vector.broadcast %cst_8 : f32 to vector<8x512xf32>
    %56 = arith.subf %54, %55 : vector<8x512xf32>
    %57 = math.log %49 : vector<8x512xf32>
    %cst_9 = arith.constant -2.000000e+00 : f32
    %58 = vector.broadcast %cst_9 : f32 to vector<8x512xf32>
    %59 = arith.mulf %58, %57 : vector<8x512xf32>
    %60 = math.sqrt %59 : vector<8x512xf32>
    %cst_10 = arith.constant 6.28318548 : f32
    %61 = vector.broadcast %cst_10 : f32 to vector<8x512xf32>
    %62 = arith.mulf %61, %56 : vector<8x512xf32>
    %63 = math.cos %62 : vector<8x512xf32>
    %64 = arith.mulf %60, %63 : vector<8x512xf32>
    %cst_11 = arith.constant 1.500000e-01 : f32
    %65 = vector.broadcast %cst_11 : f32 to vector<8x512xf32>
    %66 = arith.mulf %65, %64 : vector<8x512xf32>
    %cst_12 = arith.constant 0.000000e+00 : f32
    %67 = vector.broadcast %cst_12 : f32 to vector<8x512xf32>
    %68 = arith.addf %67, %66 : vector<8x512xf32>
    %69 = math.sin %62 : vector<8x512xf32>
    %70 = arith.mulf %60, %69 : vector<8x512xf32>
    %cst_13 = arith.constant 1.500000e-01 : f32
    %71 = vector.broadcast %cst_13 : f32 to vector<8x512xf32>
    %72 = arith.mulf %71, %70 : vector<8x512xf32>
    %cst_14 = arith.constant 0.000000e+00 : f32
    %73 = vector.broadcast %cst_14 : f32 to vector<8x512xf32>
    %74 = arith.addf %73, %72 : vector<8x512xf32>
    %c0_15 = arith.constant 0 : index
    %c0_16 = arith.constant 0 : index
    %75 = vector.load %arg2[%c0_15, %c0_16] : memref<16x512xf32, #tpu.memory_space<vmem>>, vector<8x512xf32>
    %c8 = arith.constant 8 : index
    %c0_17 = arith.constant 0 : index
    %76 = vector.load %arg2[%c8, %c0_17] : memref<16x512xf32, #tpu.memory_space<vmem>>, vector<8x512xf32>
    %77 = arith.addf %75, %68 : vector<8x512xf32>
    %c0_18 = arith.constant 0 : index
    %c0_19 = arith.constant 0 : index
    %78 = vector.load %arg3[%c0_18, %c0_19] : memref<16x512xf32, #tpu.memory_space<vmem>>, vector<8x512xf32>
    tpu.vector_store %arg3[%c0_18, %c0_19], %77 {strides = array<i32>} : memref<16x512xf32, #tpu.memory_space<vmem>>, vector<8x512xf32>,
    %79 = arith.addf %76, %74 : vector<8x512xf32>
    %c8_20 = arith.constant 8 : index
    %c0_21 = arith.constant 0 : index
    %80 = vector.load %arg3[%c8_20, %c0_21] : memref<16x512xf32, #tpu.memory_space<vmem>>, vector<8x512xf32>
    tpu.vector_store %arg3[%c8_20, %c0_21], %79 {strides = array<i32>} : memref<16x512xf32, #tpu.memory_space<vmem>>, vector<8x512xf32>,
    return
  }
  func.func @transform_0(%arg0: i32, %arg1: memref<1xi32, #tpu.memory_space<smem>>) -> (i32, i32) {
    %c0_i32 = arith.constant 0 : i32
    %c0_i32_0 = arith.constant 0 : i32
    return %arg0, %c0_i32 : i32, i32
  }
  func.func @transform_1(%arg0: i32, %arg1: memref<1xi32, #tpu.memory_space<smem>>) -> (i32, i32) {
    %c0_i32 = arith.constant 0 : i32
    %c0_i32_0 = arith.constant 0 : i32
    return %arg0, %c0_i32 : i32, i32
  }
}

</mosaic_0001>

<bundles_post_ra>
// kernel: tpu_custom_call.1
= control target key start
LH: loop header
LB: loop body
LE: loop exit
PB: predicated region body
PF: predicated region fallthrough
CT: control target
= control target key end

     0   :  { %8 = vsyncpa [#allocation5], 0  ;;  %s2290_s0 = inlined_call_operand.<no memory space> [shape: s32[1], index: 0, kind: input, shape index: {}]   ;;  %s2291_s1 = inlined_call_operand.hbm [shape: f32[16,512], index: 1, kind: input, shape index: {}]   ;;  %s2292_s2 = inlined_call_operand.hbm [shape: f32[16,512], index: 2, kind: output, shape index: {}]  }
   0x1   :  { %9 = vsyncpa [#allocation6], 0  ;;  %s14_s11 = sshll.u32 %s2291_s1, 4  ;;  %s1630_s12 = smov [#allocation4]   ;;  %s15_s11 = int_to_ptr.hbm [resolvable:$true] %s14_s11 }
   0x2   :  { %s16_s13 = sshll.u32 %s1630_s12, 4  ;;  %s1631_s14 = smov 512   ;;  %s17_s13 = int_to_ptr.vmem [resolvable:$true] %s16_s13 }
   0x3   :  { %s1632_s15 = smov 32  }
   0x4   :  { %22 = dma.hbm_to_vmem [thread:$0]  %s15_s11, 1024, %s17_s13, [#allocation5], %s1631_s14, %s1631_s14, %s1632_s15  }
   0x5   :  { %1626 = dma.done.wait [#allocation5], 1024  }
   0x6   :  { %1627 = vsyncadd [#allocation5], 4294966272  ;;  %v27_v0 = vlaneseq  ;;  %s46_s18 = smul.u32 2654435769, %s2290_s0  ;;  %s1510_s26 = sshll.u32 %s2292_s2, 4  ;;  %s1511_s26 = int_to_ptr.hbm [resolvable:$true] %s1510_s26 }
   0x7   :  { %s48_s21 = smul.u32 3266489909, %s2290_s0  ;;  %s1640_s0 = smov [#allocation7]  }
   0x8   :  { %v28_v1 = vshrl.u32 %v27_v0, 7  ;;  %v30_v2 = vand.u32 127, %v27_v0  ;;  %s47_s1 = sadd.s32 2246822507, %s46_s18  ;;  %s1508_s23 = sshll.u32 %s1640_s0, 4  ;;  %s1509_s23 = int_to_ptr.vmem [resolvable:$true] %s1508_s23 }
   0x9   :  { %v50_v6 = vstv %s47_s1  ;;  %s49_s22 = sadd.s32 668265263, %s48_s21 }
   0xa   :  { %v31_v3 = vadd.s32 128, %v30_v2  ;;  %v32_v4 = vadd.s32 256, %v30_v2  ;;  %v34_v5 = vmul.u32 512, %v28_v1  ;;  %v33_v19 = vadd.s32 384, %v30_v2 }
   0xb   :  { %v87_v37 = vstv %s49_s22 }
   0xc   :  { %v35_v7 = vadd.s32 %v34_v5, %v30_v2  ;;  %v36_v8 = vadd.s32 %v34_v5, %v31_v3  ;;  %v37_v9 = vadd.s32 %v34_v5, %v32_v4  ;;  %v38_v26 = vadd.s32 %v34_v5, %v33_v19 }
   0xe   :  { %v51_v10 = vxor.u32 %v50_v6, %v35_v7  ;;  %v52_v11 = vxor.u32 %v50_v6, %v36_v8  ;;  %v53_v12 = vxor.u32 %v50_v6, %v37_v9  ;;  %v54_v33 = vxor.u32 %v50_v6, %v38_v26 }
  0x10   :  { %v55_v13 = vshrl.u32 %v51_v10, 16  ;;  %v56_v14 = vshrl.u32 %v52_v11, 16  ;;  %v57_v15 = vshrl.u32 %v53_v12, 16  ;;  %v58_v41 = vshrl.u32 %v54_v33, 16 }
  0x12   :  { %v59_v16 = vxor.u32 %v55_v13, %v51_v10  ;;  %v60_v17 = vxor.u32 %v56_v14, %v52_v11  ;;  %v61_v18 = vxor.u32 %v57_v15, %v53_v12  ;;  %v62_v48 = vxor.u32 %v58_v41, %v54_v33 }
  0x14   :  { %v63_v20 = vmul.u32 2146121005, %v59_v16  ;;  %v64_v21 = vmul.u32 2146121005, %v60_v17  ;;  %v65_v22 = vmul.u32 2146121005, %v61_v18 }
  0x15   :  { %v66_v54 = vmul.u32 2146121005, %v62_v48  ;;  %v1634_v48 = vmov 2475754826  }
  0x16   :  { %v67_v23 = vshrl.u32 %v63_v20, 15  ;;  %v68_v24 = vshrl.u32 %v64_v21, 15  ;;  %v69_v25 = vshrl.u32 %v65_v22, 15 }
  0x17   :  { %v70_v60 = vshrl.u32 %v66_v54, 15 }
  0x18   :  { %v71_v27 = vxor.u32 %v67_v23, %v63_v20  ;;  %v72_v28 = vxor.u32 %v68_v24, %v64_v21  ;;  %v73_v29 = vxor.u32 %v69_v25, %v65_v22 }
  0x19   :  { %v74_v2 = vxor.u32 %v70_v60, %v66_v54  ;;  %v1637_v60 = vmov 920167782  }
  0x1a   :  { %v75_v30 = vmul.u32 2221713035, %v71_v27  ;;  %v76_v31 = vmul.u32 2221713035, %v72_v28  ;;  %v77_v32 = vmul.u32 2221713035, %v73_v29 }
  0x1b   :  { %v78_v8 = vmul.u32 2221713035, %v74_v2 }
  0x1c   :  { %v79_v34 = vshrl.u32 %v75_v30, 16  ;;  %v80_v35 = vshrl.u32 %v76_v31, 16  ;;  %v81_v36 = vshrl.u32 %v77_v32, 16 }
  0x1d   :  { %v82_v14 = vshrl.u32 %v78_v8, 16 }
  0x1e   :  { %v1668_v38 = vxor.u32 %v79_v34, %v75_v30  ;;  %v1670_v39 = vxor.u32 %v80_v35, %v76_v31  ;;  %v1672_v40 = vxor.u32 %v81_v36, %v77_v32 }
  0x1f   :  { %v1681_v18 = vxor.u32 %v82_v14, %v78_v8 }
  0x20   :  { %v88_v42 = vxor.u32 %v87_v37, %v1668_v38  ;;  %v89_v43 = vxor.u32 %v87_v37, %v1670_v39  ;;  %v90_v44 = vxor.u32 %v87_v37, %v1672_v40 }
  0x21   :  { %v91_v26 = vxor.u32 %v87_v37, %v1681_v18 }
  0x22   :  { %v92_v45 = vshrl.u32 %v88_v42, 16  ;;  %v93_v46 = vshrl.u32 %v89_v43, 16  ;;  %v94_v47 = vshrl.u32 %v90_v44, 16 }
  0x23   :  { %v95_v33 = vshrl.u32 %v91_v26, 16 }
  0x24   :  { %v96_v49 = vxor.u32 %v92_v45, %v88_v42  ;;  %v97_v50 = vxor.u32 %v93_v46, %v89_v43  ;;  %v98_v51 = vxor.u32 %v94_v47, %v90_v44  ;;  %v1633_v46 = vmov 683565275  }
  0x25   :  { %v1694_v44 = vxor.u32 %v95_v33, %v91_v26 }
  0x26   :  { %v100_v52 = vmul.u32 2146121005, %v96_v49  ;;  %v101_v53 = vmul.u32 2146121005, %v97_v50  ;;  %v102_v55 = vmul.u32 2146121005, %v98_v51 }
  0x27   :  { %v1635_v51 = vmov 2131351028  }
  0x28   :  { %v104_v56 = vshrl.u32 %v100_v52, 15  ;;  %v105_v57 = vshrl.u32 %v101_v53, 15  ;;  %v106_v61 = vshrl.u32 %v102_v55, 15 }
  0x2a   :  { %v108_v58 = vxor.u32 %v104_v56, %v100_v52  ;;  %v109_v59 = vxor.u32 %v105_v57, %v101_v53  ;;  %v110_v3 = vxor.u32 %v106_v61, %v102_v55  ;;  %v1636_v53 = vmov 2102212464  }
  0x2c   :  { %v112_v62 = vmul.u32 2221713035, %v108_v58  ;;  %v113_v63 = vmul.u32 2221713035, %v109_v59  ;;  %v114_v9 = vmul.u32 2221713035, %v110_v3 }
  0x2d   :  { %v1638_v3 = vmov 1326507024  }
  0x2e   :  { %v116_v0 = vshrl.u32 %v112_v62, 16  ;;  %v117_v1 = vshrl.u32 %v113_v63, 16  ;;  %v118_v15 = vshrl.u32 %v114_v9, 16 }
  0x30   :  { %v120_v4 = vxor.u32 %v116_v0, %v112_v62  ;;  %v121_v5 = vxor.u32 %v117_v1, %v113_v63  ;;  %v122_v19 = vxor.u32 %v118_v15, %v114_v9 }
  0x32   :  { %v140_v6 = vshrl.u32 %v120_v4, 9  ;;  %v141_v7 = vshrl.u32 %v121_v5, 9  ;;  %v142_v27 = vshrl.u32 %v122_v19, 9 }
  0x34   :  { %v144_v10 = vor.u32 1065353216, %v140_v6  ;;  %v145_v11 = vor.u32 1065353216, %v141_v7  ;;  %v146_v34 = vor.u32 1065353216, %v142_v27 }
  0x36   :  { %v1523_v12 = vadd.f32 -1.0, %v144_v10  ;;  %v1524_v13 = vadd.f32 -1.0, %v145_v11  ;;  %v1696_v37 = vadd.f32 -1.0, %v146_v34 }
  0x38   :  { %v1677_v16 = vmul.f32 6.2831855, %v1523_v12  ;;  %v1679_v17 = vmul.f32 6.2831855, %v1524_v13 }
  0x3a   :  { %v220_v20 = vand.u32 2147483647, %v1677_v16  ;;  %v223_v21 = vand.u32 2139095040, %v1677_v16  ;;  %v377_v22 = vand.u32 2139095040, %v1679_v17  ;;  %v374_v30 = vand.u32 2147483647, %v1679_v17 }
  0x3c   :  { %v224_v23 = vshrl.u32 %v223_v21, 23  ;;  %v227_v24 = vand.u32 8388607, %v220_v20  ;;  %v378_v25 = vshrl.u32 %v377_v22, 23  ;;  %v381_v36 = vand.u32 8388607, %v374_v30 }
  0x3e   :  { %v1527_v28 = vadd.s32 4294967169, %v224_v23  ;;  %v228_v31 = vor.u32 8388608, %v227_v24  ;;  %v1530_v32 = vadd.s32 4294967169, %v378_v25  ;;  %v382_v55 = vor.u32 8388608, %v381_v36 }
  0x40   :  { %v230_v29 = vadd.s32 1, %v1527_v28  ;;  %v1692_v42 = vshll.u32 %v228_v31, 8  ;;  %v384_v43 = vadd.s32 1, %v1530_v32  ;;  %v1712_v24 = vshll.u32 %v382_v55, 8 }
  0x42   :  { %vm231_vm0 = vcmp.gt.s32.totalorder %v230_v29, 0  ;;  %v269_v58 = vand.u32 65535, %v1692_v42  ;;  %vm385_vm1 = vcmp.gt.s32.totalorder %v384_v43, 0  ;;  %v270_v63 = vshrl.u32 %v1692_v42, 16 }
  0x43   :  { %v232_v35 = vsel %vm231_vm0, %v230_v29, 0  ;;  %v386_v7 = vsel %vm385_vm1, %v384_v43, 0 }
  0x44   :  { %v234_v41 = vand.u32 31, %v232_v35  ;;  %v233_v50 = vshrl.u32 %v232_v35, 5  ;;  %v388_v23 = vand.u32 31, %v386_v7  ;;  %v1715_v28 = vshrl.u32 %v386_v7, 5 }
  0x46   :  { %v235_v45 = vsub.s32 32, %v234_v41  ;;  %v237_v47 = vshll.u32 %v1633_v46, %v234_v41  ;;  %v240_v49 = vshll.u32 %v1634_v48, %v234_v41  ;;  %v243_v52 = vshll.u32 %v1635_v51, %v234_v41 }
  0x47   :  { %v246_v54 = vshll.u32 %v1636_v53, %v234_v41  ;;  %v249_v62 = vshll.u32 %v1637_v60, %v234_v41  ;;  %vm252_vm2 = vcmp.lt.s32.totalorder %v233_v50, 1  ;;  %vm253_vm3 = vcmp.lt.s32.totalorder %v233_v50, 2 }
  0x48   :  { %v238_v56 = vshrl.u32 %v1634_v48, %v235_v45  ;;  %v241_v57 = vshrl.u32 %v1635_v51, %v235_v45  ;;  %v244_v59 = vshrl.u32 %v1636_v53, %v235_v45  ;;  %v247_v61 = vshrl.u32 %v1637_v60, %v235_v45 }
  0x49   :  { %v236_v0 = vshrl.u32 %v1633_v46, %v235_v45  ;;  %v250_v4 = vshrl.u32 %v1638_v3, %v235_v45  ;;  %vm254_vm4 = vcmp.lt.s32.totalorder %v233_v50, 3  ;;  %vm255_vm5 = vcmp.lt.s32.totalorder %v233_v50, 4 }
  0x4a   :  { %v239_v1 = vor.u32 %v238_v56, %v237_v47  ;;  %v242_v2 = vor.u32 %v241_v57, %v240_v49  ;;  %v245_v5 = vor.u32 %v244_v59, %v243_v52  ;;  %v248_v6 = vor.u32 %v247_v61, %v246_v54 }
  0x4b   :  { %v251_v8 = vor.u32 %v250_v4, %v249_v62  ;;  %v1720_v33 = vsub.s32 32, %v388_v23  ;;  %v391_v41 = vshll.u32 %v1633_v46, %v388_v23  ;;  %v1639_v4 = vmov 0  }
  0x4c   :  { %v257_v9 = vsel %vm255_vm5, %v245_v5, 2102212464  ;;  %v260_v10 = vsel %vm252_vm2, %v239_v1, %v242_v2  ;;  %v261_v11 = vsel %vm255_vm5, %v248_v6, 920167782  ;;  %v264_v12 = vsel %vm252_vm2, %v242_v2, %v245_v5 }
  0x4d   :  { %v256_v13 = vsel %vm252_vm2, %v236_v0, %v239_v1  ;;  %v258_v14 = vsel %vm254_vm4, %v242_v2, %v257_v9  ;;  %v262_v15 = vsel %vm254_vm4, %v245_v5, %v261_v11  ;;  %v265_v19 = vsel %vm255_vm5, %v251_v8, 1326507024 }
  0x4e   :  { %v263_v21 = vsel %vm253_vm3, %v260_v10, %v262_v15  ;;  %v266_v22 = vsel %vm254_vm4, %v248_v6, %v265_v19  ;;  %v1718_v29 = vsel %vm253_vm3, %v256_v13, %v258_v14  ;;  %v392_v1 = vshrl.u32 %v1634_v48, %v1720_v33 }
  0x4f   :  { %v267_v25 = vsel %vm253_vm3, %v264_v12, %v266_v22  ;;  %v293_v26 = vand.u32 65535, %v263_v21  ;;  %v294_v27 = vshrl.u32 %v263_v21, 16  ;;  %v395_v13 = vshrl.u32 %v1635_v51, %v1720_v33 }
  0x50   :  { %v271_v31 = vand.u32 65535, %v267_v25  ;;  %v272_v32 = vshrl.u32 %v267_v25, 16  ;;  %v1731_v10 = vor.u32 %v392_v1, %v391_v41  ;;  %v397_v14 = vshll.u32 %v1635_v51, %v388_v23 }
  0x51   :  { %v295_v34 = vmul.u32 %v293_v26, %v269_v58  ;;  %v296_v35 = vmul.u32 %v294_v27, %v269_v58  ;;  %v297_v36 = vmul.u32 %v293_v26, %v270_v63  ;;  %v298_v49 = vmul.u32 %v294_v27, %v270_v63 }
  0x52   :  { %v273_v43 = vmul.u32 %v271_v31, %v269_v58  ;;  %v274_v45 = vmul.u32 %v272_v32, %v269_v58  ;;  %v275_v47 = vmul.u32 %v271_v31, %v270_v63  ;;  %v276_v52 = vmul.u32 %v272_v32, %v270_v63 }
  0x53   :  { %v299_v54 = vshll.u32 %v296_v35, 16  ;;  %v300_v55 = vshrl.u32 %v296_v35, 16  ;;  %v301_v56 = vshll.u32 %v297_v36, 16  ;;  %v302_v61 = vshrl.u32 %v297_v36, 16 }
  0x54   :  { %v277_v50 = vshll.u32 %v274_v45, 16  ;;  %v278_v57 = vshrl.u32 %v274_v45, 16  ;;  %v279_v59 = vshll.u32 %v275_v47, 16  ;;  %v280_v62 = vshrl.u32 %v275_v47, 16 }
  0x55   :  { %vm303_vm6 = vc.u32 %v295_v34, %v299_v54  ;;  %v305_v0 = vadd.s32 %v299_v54, %v295_v34  ;;  %v394_v63 = vshll.u32 %v1634_v48, %v388_v23  ;;  %v398_v19 = vshrl.u32 %v1636_v53, %v1720_v33 }
  0x56   :  { %vm281_vm7 = vc.u32 %v273_v43, %v277_v50  ;;  %v283_v2 = vadd.s32 %v277_v50, %v273_v43  ;;  %v304_v58 = vsel %vm303_vm6, 1, %v1639_v4  ;;  %v400_v21 = vshll.u32 %v1636_v53, %v388_v23 }
  0x57   :  { %v282_v5 = vsel %vm281_vm7, 1, %v1639_v4  ;;  %v306_v6 = vadd.s32 %v304_v58, %v298_v49  ;;  %vm307_vm8 = vc.u32 %v305_v0, %v301_v56  ;;  %v1728_v7 = vadd.s32 %v305_v0, %v301_v56 }
  0x58   :  { %v284_v8 = vadd.s32 %v282_v5, %v276_v52  ;;  %vm285_vm9 = vc.u32 %v283_v2, %v279_v59  ;;  %v308_v9 = vsel %vm307_vm8, 1, %v1639_v4  ;;  %v401_v22 = vshrl.u32 %v1637_v60, %v1720_v33 }
  0x59   :  { %v286_v11 = vsel %vm285_vm9, 1, %v1639_v4  ;;  %v310_v12 = vadd.s32 %v308_v9, %v306_v6  ;;  %v1742_v26 = vor.u32 %v395_v13, %v394_v63  ;;  %v403_v27 = vshll.u32 %v1637_v60, %v388_v23 }
  0x5a   :  { %v288_v15 = vadd.s32 %v286_v11, %v284_v8  ;;  %v404_v31 = vshrl.u32 %v1638_v3, %v1720_v33  ;;  %v1747_v34 = vor.u32 %v398_v19, %v397_v14  ;;  %v402_v35 = vor.u32 %v401_v22, %v400_v21 }
  0x5b   :  { %v311_v25 = vadd.s32 %v310_v12, %v300_v55  ;;  %vm406_vm10 = vcmp.lt.s32.totalorder %v1715_v28, 1  ;;  %v313_v41 = vmul.u32 %v1692_v42, %v1718_v29  ;;  %vm408_vm11 = vcmp.lt.s32.totalorder %v1715_v28, 3 }
  0x5c   :  { %v289_v32 = vadd.s32 %v288_v15, %v278_v57  ;;  %v405_v43 = vor.u32 %v404_v31, %v403_v27  ;;  %vm407_vm12 = vcmp.lt.s32.totalorder %v1715_v28, 2  ;;  %vm409_vm13 = vcmp.lt.s32.totalorder %v1715_v28, 4 }
  0x5d   :  { %v312_v36 = vadd.s32 %v311_v25, %v302_v61  ;;  %v414_v23 = vsel %vm406_vm10, %v1731_v10, %v1742_v26  ;;  %v124_v47 = vshrl.u32 %v1668_v38, 9  ;;  %v415_v42 = vsel %vm409_vm13, %v402_v35, 920167782 }
  0x5e   :  { %v1753_v45 = vadd.s32 %v289_v32, %v280_v62  ;;  %v103_v29 = vmul.u32 2146121005, %v1694_v44  ;;  %v416_v52 = vsel %vm408_vm11, %v1747_v34, %v415_v42  ;;  %v418_v54 = vsel %vm406_vm10, %v1742_v26, %v1747_v34 }
  0x5f   :  { %v316_v49 = vadd.s32 1, %v312_v36  ;;  %v1775_v38 = vmul.f32 6.2831855, %v1696_v37  ;;  %v417_v56 = vsel %vm407_vm12, %v414_v23, %v416_v52  ;;  %v419_v44 = vsel %vm409_vm13, %v405_v43, 1326507024 }
  0x60   :  { %vm315_vm14 = vc.u32 %v1753_v45, %v1728_v7  ;;  %v125_v50 = vshrl.u32 %v1670_v39, 9  ;;  %v420_v59 = vsel %vm408_vm11, %v402_v35, %v419_v44  ;;  %v423_v61 = vand.u32 65535, %v1712_v24 }
  0x61   :  { %v317_v55 = vsel %vm315_vm14, %v316_v49, %v312_v36  ;;  %v126_v62 = vshrl.u32 %v1672_v40, 9  ;;  %v421_v37 = vsel %vm407_vm12, %v418_v54, %v420_v59  ;;  %v424_v0 = vshrl.u32 %v1712_v24, 16 }
  0x62   :  { %v318_v57 = vadd.s32 %v317_v55, %v313_v41  ;;  %v447_v1 = vand.u32 65535, %v417_v56  ;;  %v425_v58 = vand.u32 65535, %v421_v37  ;;  %v426_v63 = vshrl.u32 %v421_v37, 16 }
  0x63   :  { %v448_v5 = vshrl.u32 %v417_v56, 16  ;;  %v107_v6 = vshrl.u32 %v103_v29, 15  ;;  %v127_v39 = vshrl.u32 %v1681_v18, 9  ;;  %v128_v8 = vor.u32 1065353216, %v124_v47 }
  0x64   :  { %v319_v2 = vadd.s32 536870912, %v318_v57  ;;  %v531_v9 = vand.u32 2139095040, %v1775_v38  ;;  %v427_v12 = vmul.u32 %v425_v58, %v423_v61  ;;  %v428_v40 = vmul.u32 %v426_v63, %v423_v61 }
  0x65   :  { %v429_v13 = vmul.u32 %v425_v58, %v424_v0  ;;  %v1793_v14 = vor.u32 1065353216, %v125_v50  ;;  %v449_v15 = vmul.u32 %v447_v1, %v423_v61  ;;  %v450_v19 = vmul.u32 %v448_v5, %v423_v61 }
  0x66   :  { %v1791_v11 = vshrl.u32 %v319_v2, 30  ;;  %v451_v21 = vmul.u32 %v447_v1, %v424_v0  ;;  %v1795_v22 = vor.u32 1065353216, %v126_v62  ;;  %v430_v27 = vmul.u32 %v426_v63, %v424_v0 }
  0x67   :  { %v431_v31 = vshll.u32 %v428_v40, 16  ;;  %v136_v18 = vsub.f32 2.0, %v128_v8  ;;  %v433_v32 = vshll.u32 %v429_v13, 16  ;;  %v453_v35 = vshll.u32 %v450_v19, 16 }
  0x68   :  { %v321_v25 = vshll.u32 %v1791_v11, 30  ;;  %v532_v36 = vshrl.u32 %v531_v9, 23  ;;  %v111_v41 = vxor.u32 %v107_v6, %v103_v29  ;;  %v452_v23 = vmul.u32 %v448_v5, %v424_v0 }
  0x69   :  { %vm435_vm15 = vc.u32 %v427_v12, %v431_v31  ;;  %v437_v43 = vadd.s32 %v431_v31, %v427_v12  ;;  %v390_v47 = vshrl.u32 %v1633_v46, %v1720_v33  ;;  %v455_v42 = vshll.u32 %v451_v21, 16 }
  0x6a   :  { %v436_v49 = vsel %vm435_vm15, 1, %v1639_v4  ;;  %vm457_vm0 = vc.u32 %v449_v15, %v453_v35  ;;  %v1801_v52 = vsub.s32 %v318_v57, %v321_v25  ;;  %v432_v54 = vshrl.u32 %v428_v40, 16 }
  0x6b   :  { %v438_v55 = vadd.s32 %v436_v49, %v430_v27  ;;  %vm439_vm1 = vc.u32 %v437_v43, %v433_v32  ;;  %v458_v44 = vsel %vm457_vm0, 1, %v1639_v4  ;;  %v459_v29 = vadd.s32 %v453_v35, %v449_v15 }
  0x6c   :  { %v440_v56 = vsel %vm439_vm1, 1, %v1639_v4  ;;  %v1533_v50 = vadd.s32 4294967169, %v532_v36  ;;  %v115_v59 = vmul.u32 2221713035, %v111_v41  ;;  %v411_v33 = vsel %vm409_vm13, %v1747_v34, 2102212464 }
  0x6d   :  { %v442_v61 = vadd.s32 %v440_v56, %v438_v55  ;;  %v460_v62 = vadd.s32 %v458_v44, %v452_v23  ;;  %v434_v37 = vshrl.u32 %v429_v13, 16  ;;  %v454_v0 = vshrl.u32 %v450_v19, 16 }
  0x6e   :  { %vm461_vm2 = vc.u32 %v459_v29, %v455_v42  ;;  %v538_v57 = vadd.s32 1, %v1533_v50  ;;  %v324_v1 = vsub.s32 0, %v1801_v52  ;;  %v410_v2 = vsel %vm406_vm10, %v390_v47, %v1731_v10 }
  0x6f   :  { %v443_v58 = vadd.s32 %v442_v61, %v432_v54  ;;  %v462_v63 = vsel %vm461_vm2, 1, %v1639_v4  ;;  %vm323_vm3 = vcmp.lt.s32.totalorder %v1801_v52, 0  ;;  %v412_v34 = vsel %vm408_vm11, %v1742_v26, %v411_v33 }
  0x70   :  { %v464_v5 = vadd.s32 %v462_v63, %v460_v62  ;;  %vm539_vm4 = vcmp.gt.s32.totalorder %v538_v57, 0  ;;  %v131_v6 = vor.u32 1065353216, %v127_v39  ;;  %v456_v8 = vshrl.u32 %v451_v21, 16 }
  0x71   :  { %v528_v9 = vand.u32 2147483647, %v1775_v38  ;;  %v1818_v12 = vadd.s32 %v443_v58, %v434_v37  ;;  %v1820_v40 = vadd.s32 %v459_v29, %v455_v42  ;;  %v540_v13 = vsel %vm539_vm4, %v538_v57, 0 }
  0x72   :  { %v465_v10 = vadd.s32 %v464_v5, %v454_v0  ;;  %v137_v15 = vsub.f32 2.0, %v1793_v14  ;;  %1562 = vlog2.f32 %v136_v18  ;;  %v325_v19 = vsel %vm323_vm3, %v324_v1, %v1801_v52 }
  0x73   :  { %v413_v26 = vsel %vm407_vm12, %v410_v2, %v412_v34  ;;  %v119_v25 = vshrl.u32 %v115_v59, 16  ;;  %v138_v39 = vsub.f32 2.0, %v1795_v22  ;;  %v542_v27 = vand.u32 31, %v540_v13 }
  0x74   :  { %v466_v21 = vadd.s32 %v465_v10, %v456_v8  ;;  %v326_v31 = vclz %v325_v19  ;;  %v467_v32 = vmul.u32 %v1712_v24, %v413_v26  ;;  %vm469_vm5 = vc.u32 %v1818_v12, %v1820_v40 }
  0x75   :  { %v535_v14 = vand.u32 8388607, %v528_v9  ;;  %v139_v18 = vsub.f32 2.0, %v131_v6  ;;  %1564 = vlog2.f32 %v137_v15  ;;  %v1832_v36 = vsub.s32 32, %v542_v27 }
  0x76   :  { %v470_v35 = vadd.s32 1, %v466_v21  ;;  %v123_v28 = vxor.u32 %v119_v25, %v115_v59  ;;  %1566 = vlog2.f32 %v138_v39  ;;  %v1834_v41 = vshrl.u32 %v540_v13, 5 }
  0x77   :  { %v548_v22 = vshll.u32 %v1634_v48, %v542_v27  ;;  %v549_v24 = vshrl.u32 %v1635_v51, %v1832_v36  ;;  %v551_v47 = vshll.u32 %v1635_v51, %v542_v27  ;;  %v554_v49 = vshll.u32 %v1636_v53, %v542_v27 }
  0x78   :  { %v1563_v43 = vpop.eup %1562  ;;  %v471_v23 = vsel %vm469_vm5, %v470_v35, %v466_v21  ;;  %v1528_v42 = vadd.s32 4294967294, %v326_v31  ;;  %v536_v55 = vor.u32 8388608, %v535_v14  ;;  %v552_v56 = vshrl.u32 %v1636_v53, %v1832_v36 }
  0x79   :  { %v472_v54 = vadd.s32 %v471_v23, %v467_v32  ;;  %v545_v44 = vshll.u32 %v1633_v46, %v542_v27  ;;  %v546_v29 = vshrl.u32 %v1634_v48, %v1832_v36  ;;  %v555_v50 = vshrl.u32 %v1637_v60, %v1832_v36 }
  0x7a   :  { %v557_v59 = vshll.u32 %v1637_v60, %v542_v27  ;;  %v143_v33 = vshrl.u32 %v123_v28, 9  ;;  %v157_v61 = vmul.f32 0.6931472, %v1563_v43  ;;  %v558_v37 = vshrl.u32 %v1638_v3, %v1832_v36 }
  0x7b   :  { %v473_v62 = vadd.s32 536870912, %v472_v54  ;;  %v1565_v0 = vpop.eup %1564  ;;  %v1851_v57 = vor.u32 %v549_v24, %v548_v22  ;;  %v1853_v1 = vor.u32 %v552_v56, %v551_v47  ;;  %v556_v2 = vor.u32 %v555_v50, %v554_v49 }
  0x7c   :  { %vm563_vm6 = vcmp.lt.s32.totalorder %v1834_v41, 4  ;;  %v1567_v58 = vpop.eup %1566  ;;  %vm1529_vm7 = vcmp.lt.s32.totalorder %v1528_v42, 0  ;;  %v559_v34 = vor.u32 %v558_v37, %v557_v59  ;;  %vm560_vm8 = vcmp.lt.s32.totalorder %v1834_v41, 1 }
  0x7d   :  { %v1856_v63 = vshrl.u32 %v473_v62, 30  ;;  %1568 = vlog2.f32 %v139_v18  ;;  %v1859_v5 = vor.u32 %v546_v29, %v545_v44  ;;  %v1861_v6 = vshll.u32 %v536_v55, 8 }
  0x7e   :  { %v159_v8 = vmul.f32 0.6931472, %v1565_v0  ;;  %vm562_vm9 = vcmp.lt.s32.totalorder %v1834_v41, 3  ;;  %v569_v13 = vsel %vm563_vm6, %v556_v2, 920167782  ;;  %v329_v15 = vsel %vm1529_vm7, 0, %v1528_v42 }
  0x7f   :  { %v475_v10 = vshll.u32 %v1856_v63, 30  ;;  %vm561_vm10 = vcmp.lt.s32.totalorder %v1834_v41, 2  ;;  %v572_v19 = vsel %vm560_vm8, %v1851_v57, %v1853_v1  ;;  %v573_v26 = vsel %vm563_vm6, %v559_v34, 1326507024 }
  0x80   :  { %v147_v25 = vor.u32 1065353216, %v143_v33  ;;  %v161_v39 = vmul.f32 0.6931472, %v1567_v58  ;;  %v1874_v21 = vmul.f32 -2.0, %v157_v61  ;;  %v568_v31 = vsel %vm560_vm8, %v1859_v5, %v1851_v57 }
  0x81   :  { %v1876_v27 = vsub.s32 %v472_v54, %v475_v10  ;;  %v570_v32 = vsel %vm562_vm9, %v1853_v1, %v569_v13  ;;  %v574_v14 = vsel %vm562_vm9, %v556_v2, %v573_v26  ;;  %v577_v18 = vand.u32 65535, %v1861_v6 }
  0x82   :  { %v334_v35 = vsub.s32 4294967266, %v329_v15  ;;  %v575_v22 = vsel %vm561_vm10, %v572_v19, %v574_v14  ;;  %v1892_v23 = vmul.f32 -2.0, %v159_v8  ;;  %v578_v24 = vshrl.u32 %v1861_v6, 16 }
  0x83   :  { %vm477_vm11 = vcmp.lt.s32.totalorder %v1876_v27, 0  ;;  %v478_v28 = vsub.s32 0, %v1876_v27  ;;  %v1569_v43 = vpop.eup %1568  ;;  %v579_v47 = vand.u32 65535, %v575_v22  ;;  %v580_v49 = vshrl.u32 %v575_v22, 16 }
  0x84   :  { %v1526_v42 = vadd.f32 -1.0, %v147_v25  ;;  %v314_v54 = vadd.s32 %v1728_v7, %v1753_v45  ;;  %v571_v56 = vsel %vm561_vm10, %v568_v31, %v570_v32  ;;  %v330_v44 = vsub.s32 32, %v329_v15 }
  0x85   :  { %v479_v55 = vsel %vm477_vm11, %v478_v28, %v1876_v27  ;;  %v581_v50 = vmul.u32 %v579_v47, %v577_v18  ;;  %v582_v59 = vmul.u32 %v580_v49, %v577_v18  ;;  %v1900_v33 = vmul.f32 -2.0, %v161_v39 }
  0x86   :  { %v480_v29 = vclz %v479_v55  ;;  %1570 = vrsqrt.f32 %v1874_v21  ;;  %v335_v61 = vadd.s32 127, %v334_v35  ;;  %v1903_v37 = vmul.u32 %v579_v47, %v578_v24 }
  0x87   :  { %v585_v0 = vshll.u32 %v582_v59, 16  ;;  %v602_v2 = vshrl.u32 %v571_v56, 16  ;;  %1572 = vrsqrt.f32 %v1892_v23  ;;  %v1906_v7 = vmul.f32 6.2831855, %v1526_v42 }
  0x88   :  { %v1531_v62 = vadd.s32 4294967294, %v480_v29  ;;  %v331_v45 = vshll.u32 %v1801_v52, %v329_v15  ;;  %v468_v58 = vadd.s32 %v1820_v40, %v1818_v12  ;;  %v332_v34 = vshrl.u32 %v314_v54, %v330_v44 }
  0x89   :  { %v584_v8 = vmul.u32 %v580_v49, %v578_v24  ;;  %vm589_vm13 = vc.u32 %v581_v50, %v585_v0  ;;  %v336_v10 = vshll.u32 %v335_v61, 23  ;;  %v601_v26 = vand.u32 65535, %v571_v56 }
  0x8a   :  { %vm1532_vm12 = vcmp.lt.s32.totalorder %v1531_v62, 0  ;;  %v590_v19 = vsel %vm589_vm13, 1, %v1639_v4  ;;  %v587_v31 = vshll.u32 %v1903_v37, 16  ;;  %v604_v32 = vmul.u32 %v602_v2, %v577_v18 }
  0x8b   :  { %v483_v13 = vsel %vm1532_vm12, 0, %v1531_v62  ;;  %v163_v52 = vmul.f32 0.6931472, %v1569_v43  ;;  %1574 = vrsqrt.f32 %v1900_v33  ;;  %v591_v40 = vadd.s32 %v585_v0, %v581_v50 }
  0x8c   :  { %v484_v25 = vsub.s32 32, %v483_v13  ;;  %v488_v39 = vsub.s32 4294967266, %v483_v13  ;;  %v1913_v14 = vpop.eup %1570  ;;  %v592_v15 = vadd.s32 %v590_v19, %v584_v8  ;;  %v685_v35 = vand.u32 2139095040, %v1906_v7 }
  0x8d   :  { %v1917_v28 = vpop.eup %1572  ;;  %v333_v22 = vor.u32 %v332_v34, %v331_v45  ;;  %v337_v47 = vor.u32 4788187, %v336_v10  ;;  %v603_v49 = vmul.u32 %v601_v26, %v577_v18  ;;  %v605_v42 = vmul.u32 %v601_v26, %v578_v24 }
  0x8e   :  { %v489_v12 = vadd.s32 127, %v488_v39  ;;  %v485_v54 = vshll.u32 %v1876_v27, %v483_v13  ;;  %v486_v55 = vshrl.u32 %v468_v58, %v484_v25  ;;  %vm593_vm14 = vc.u32 %v591_v40, %v587_v31 }
  0x8f   :  { %v607_v56 = vshll.u32 %v604_v32, 16  ;;  %v586_v43 = vshrl.u32 %v582_v59, 16  ;;  %v594_v29 = vsel %vm593_vm14, 1, %v1639_v4  ;;  %v606_v61 = vmul.u32 %v602_v2, %v578_v24 }
  0x90   :  { %v490_v44 = vshll.u32 %v489_v12, 23  ;;  %v169_v50 = vmul.f32 %v1913_v14, %v1874_v21  ;;  %v544_v62 = vshrl.u32 %v1633_v46, %v1832_v36  ;;  %v596_v0 = vadd.s32 %v594_v29, %v592_v15 }
  0x91   :  { %v609_v45 = vshll.u32 %v605_v42, 16  ;;  %v1925_v18 = vpop.eup %1574  ;;  %v338_v34 = vand.u32 2147483647, %v337_v47  ;;  %v340_v27 = vcvt.s32.f32 %v333_v22  ;;  %v565_v58 = vsel %vm563_vm6, %v1853_v1, 2102212464 }
  0x92   :  { %vm611_vm15 = vc.u32 %v603_v49, %v607_v56  ;;  %v487_v59 = vor.u32 %v486_v55, %v485_v54  ;;  %v588_v24 = vshrl.u32 %v1903_v37, 16  ;;  %v613_v8 = vadd.s32 %v607_v56, %v603_v49 }
  0x93   :  { %v612_v2 = vsel %vm611_vm15, 1, %v1639_v4  ;;  %v491_v10 = vor.u32 4788187, %v490_v44  ;;  %v597_v13 = vadd.s32 %v596_v0, %v586_v43  ;;  %v686_v19 = vshrl.u32 %v685_v35, 23 }
  0x94   :  { %v614_v36 = vadd.s32 %v612_v2, %v606_v61  ;;  %v170_v26 = vmul.f32 %v1913_v14, %v169_v50  ;;  %v181_v25 = vmul.f32 %v1917_v28, %v1892_v23  ;;  %v608_v39 = vshrl.u32 %v604_v32, 16 }
  0x95   :  { %vm615_vm0 = vc.u32 %v613_v8, %v609_v45  ;;  %v564_v1 = vsel %vm560_vm8, %v544_v62, %v1859_v5  ;;  %v566_v37 = vsel %vm562_vm9, %v1851_v57, %v565_v58  ;;  %v1536_v12 = vadd.s32 4294967169, %v686_v19 }
  0x96   :  { %v616_v31 = vsel %vm615_vm0, 1, %v1639_v4  ;;  %v341_v40 = vmul.f32 %v340_v27, %v338_v34  ;;  %v494_v15 = vcvt.s32.f32 %v487_v59  ;;  %v610_v35 = vshrl.u32 %v605_v42, 16 }
  0x97   :  { %v618_v22 = vadd.s32 %v616_v31, %v614_v36  ;;  %v492_v47 = vand.u32 2147483647, %v491_v10  ;;  %v1942_v49 = vadd.s32 %v597_v13, %v588_v24  ;;  %v1944_v32 = vadd.s32 %v613_v8, %v609_v45 }
  0x98   :  { %v692_v54 = vadd.s32 1, %v1536_v12  ;;  %v1946_v55 = vmul.f32 -2.0, %v163_v52  ;;  %v567_v5 = vsel %vm561_vm10, %v564_v1, %v566_v37  ;;  %v171_v57 = vmul.f32 0.5, %v170_v26 }
  0x99   :  { %v619_v56 = vadd.s32 %v618_v22, %v608_v39  ;;  %v178_v44 = vand.u32 2147483648, %v1874_v21  ;;  %v182_v43 = vmul.f32 %v1917_v28, %v181_v25  ;;  %v342_v42 = vxor.u32 2147483648, %v341_v40 }
  0x9a   :  { %vm693_vm1 = vcmp.gt.s32.totalorder %v692_v54, 0  ;;  %v2293_v61 = vand.u32 2147483647, %v1906_v7  ;;  %v495_v62 = vmul.f32 %v494_v15, %v492_v47  ;;  %v621_v0 = vmul.u32 %v1861_v6, %v567_v5 }
  0x9b   :  { %v620_v29 = vadd.s32 %v619_v56, %v610_v35  ;;  %v694_v50 = vsel %vm693_vm1, %v692_v54, 0  ;;  %vm623_vm2 = vc.u32 %v1942_v49, %v1944_v32  ;;  %1576 = vrsqrt.f32 %v1946_v55 }
  0x9c   :  { %v696_v41 = vand.u32 31, %v694_v50  ;;  %vm222_vm3 = vcmp.lt.s32.totalorder %v1677_v16, 0  ;;  %v193_v34 = vmul.f32 %v1925_v18, %v1900_v33  ;;  %vm1964_vm4 = vcmp.le.f32.partialorder %v220_v20, 0.7853982 }
  0x9d   :  { %v624_v45 = vadd.s32 1, %v620_v29  ;;  %v172_v59 = vsub.f32 1.5, %v171_v57  ;;  %v183_v24 = vmul.f32 0.5, %v182_v43  ;;  %vm376_vm5 = vcmp.lt.s32.totalorder %v1679_v17, 0 }
  0x9e   :  { %v1968_v58 = vsub.s32 32, %v696_v41  ;;  %v343_v8 = vsel %vm222_vm3, %v342_v42, %v341_v40  ;;  %v496_v10 = vxor.u32 2147483648, %v495_v62  ;;  %v689_v36 = vand.u32 8388607, %v2293_v61 }
  0x9f   :  { %v625_v2 = vsel %vm623_vm2, %v624_v45, %v620_v29  ;;  %v699_v20 = vshll.u32 %v1633_v46, %v696_v41  ;;  %v702_v26 = vshll.u32 %v1634_v48, %v696_v41  ;;  %v1981_v1 = vshrl.u32 %v694_v50, 5 }
  0xa0   :  { %v626_v13 = vadd.s32 %v625_v2, %v621_v0  ;;  %v700_v19 = vshrl.u32 %v1634_v48, %v1968_v58  ;;  %v703_v25 = vshrl.u32 %v1635_v51, %v1968_v58  ;;  %v708_v37 = vshll.u32 %v1636_v53, %v696_v41 }
  0xa1   :  { %v709_v31 = vshrl.u32 %v1637_v60, %v1968_v58  ;;  %v1986_v12 = vpop.eup %1576  ;;  %v194_v40 = vmul.f32 %v1925_v18, %v193_v34  ;;  %vm1991_vm6 = vcmp.le.f32.partialorder %v374_v30, 0.7853982  ;;  %v705_v48 = vshll.u32 %v1635_v51, %v696_v41 }
  0xa2   :  { %v627_v39 = vadd.s32 536870912, %v626_v13  ;;  %v706_v35 = vshrl.u32 %v1636_v53, %v1968_v58  ;;  %v2001_v22 = vsel %vm1964_vm4, %v1677_v16, %v343_v8  ;;  %v711_v54 = vshll.u32 %v1637_v60, %v696_v41 }
  0xa3   :  { %v712_v30 = vshrl.u32 %v1638_v3, %v1968_v58  ;;  %v497_v5 = vsel %vm376_vm5, %v496_v10, %v495_v62  ;;  %v690_v56 = vor.u32 8388608, %v689_v36  ;;  %v2010_v51 = vor.u32 %v700_v19, %v699_v20 }
  0xa4   :  { %v2003_v47 = vshrl.u32 %v627_v39, 30  ;;  %v2012_v57 = vor.u32 %v703_v25, %v702_v26  ;;  %v2016_v53 = vmul.f32 %v1986_v12, %v1946_v55  ;;  %v710_v42 = vor.u32 %v709_v31, %v708_v37 }
  0xa5   :  { %vm714_vm7 = vcmp.lt.s32.totalorder %v1981_v1, 1  ;;  %v173_v60 = vmul.f32 %v1913_v14, %v172_v59  ;;  %v2023_v3 = vmul.f32 %v2001_v22, %v2001_v22  ;;  %v2025_v29 = vor.u32 %v706_v35, %v705_v48 }
  0xa6   :  { %v629_v43 = vshll.u32 %v2003_v47, 30  ;;  %vm717_vm8 = vcmp.lt.s32.totalorder %v1981_v1, 4  ;;  %v2031_v50 = vsel %vm1991_vm6, %v1679_v17, %v497_v5  ;;  %v713_v0 = vor.u32 %v712_v30, %v711_v54 }
  0xa7   :  { %vm716_vm9 = vcmp.lt.s32.totalorder %v1981_v1, 3  ;;  %v184_v41 = vsub.f32 1.5, %v183_v24  ;;  %vm715_vm10 = vcmp.lt.s32.totalorder %v1981_v1, 2  ;;  %v722_v14 = vsel %vm714_vm7, %v2010_v51, %v2012_v57 }
  0xa8   :  { %v630_v62 = vsub.s32 %v626_v13, %v629_v43  ;;  %v2039_v45 = vshll.u32 %v690_v56, 8  ;;  %v2041_v34 = vmul.f32 0.5, %v194_v40  ;;  %v723_v2 = vsel %vm717_vm8, %v710_v42, 920167782 }
  0xa9   :  { %v349_v8 = vmul.f32 -0.001358992, %v2023_v3  ;;  %v2048_v24 = vmul.f32 %v2031_v50, %v2031_v50  ;;  %v724_v10 = vsel %vm716_vm9, %v2025_v29, %v723_v2  ;;  %v726_v13 = vsel %vm714_vm7, %v2012_v57, %v2025_v29 }
  0xaa   :  { %vm631_vm11 = vcmp.lt.s32.totalorder %v630_v62, 0  ;;  %v632_v59 = vsub.s32 0, %v630_v62  ;;  %v356_v36 = vmul.f32 -0.00019511016, %v2023_v3  ;;  %v725_v19 = vsel %vm715_vm10, %v722_v14, %v724_v10 }
  0xab   :  { %v727_v26 = vsel %vm717_vm8, %v713_v0, 1326507024  ;;  %v2063_v25 = vmul.f32 %v173_v60, %v1874_v21  ;;  %v731_v31 = vand.u32 65535, %v2039_v45  ;;  %v2069_v40 = vmul.f32 %v1917_v28, %v184_v41 }
  0xac   :  { %v633_v20 = vsel %vm631_vm11, %v632_v59, %v630_v62  ;;  %v728_v37 = vsel %vm716_vm9, %v710_v42, %v727_v26  ;;  %v732_v35 = vshrl.u32 %v2039_v45, 16  ;;  %v756_v54 = vshrl.u32 %v725_v19, 16 }
  0xad   :  { %v634_v39 = vclz %v633_v20  ;;  %v729_v48 = vsel %vm715_vm10, %v726_v13, %v728_v37  ;;  %v510_v30 = vmul.f32 -0.00019511016, %v2048_v24  ;;  %v196_v60 = vsub.f32 1.5, %v2041_v34 }
  0xae   :  { %v733_v56 = vand.u32 65535, %v729_v48  ;;  %v734_v43 = vshrl.u32 %v729_v48, 16  ;;  %v350_v0 = vadd.f32 0.041655596, %v349_v8  ;;  %v357_v42 = vadd.f32 0.008332121, %v356_v36 }
  0xaf   :  { %v1534_v5 = vadd.s32 4294967294, %v634_v39  ;;  %v755_v14 = vand.u32 65535, %v725_v19  ;;  %v503_v59 = vmul.f32 -0.001358992, %v2048_v24  ;;  %v622_v28 = vadd.s32 %v1944_v32, %v1942_v49 }
  0xb0   :  { %v2079_v41 = vmul.u32 %v756_v54, %v731_v31  ;;  %v735_v10 = vmul.u32 %v733_v56, %v731_v31  ;;  %v736_v13 = vmul.u32 %v734_v43, %v731_v31  ;;  %v737_v20 = vmul.u32 %v733_v56, %v732_v35 }
  0xb1   :  { %vm1535_vm12 = vcmp.lt.s32.totalorder %v1534_v5, 0  ;;  %v511_v26 = vadd.f32 0.008332121, %v510_v30  ;;  %v738_v61 = vmul.u32 %v734_v43, %v732_v35  ;;  %v757_v36 = vmul.u32 %v755_v14, %v731_v31 }
  0xb2   :  { %v637_v2 = vsel %vm1535_vm12, 0, %v1534_v5  ;;  %v739_v8 = vshll.u32 %v736_v13, 16  ;;  %v759_v19 = vmul.u32 %v755_v14, %v732_v35  ;;  %v698_v49 = vshrl.u32 %v1633_v46, %v1968_v58 }
  0xb3   :  { %v638_v39 = vsub.s32 32, %v637_v2  ;;  %v639_v37 = vshll.u32 %v630_v62, %v637_v2  ;;  %v642_v48 = vsub.s32 4294967266, %v637_v2  ;;  %v741_v32 = vshll.u32 %v737_v20, 16 }
  0xb4   :  { %vm175_vm13 = vcmp.eq.f32.partialorder %v1874_v21, inf  ;;  %vm530_vm14 = vcmp.lt.s32.totalorder %v1775_v38, 0  ;;  %vm743_vm15 = vc.u32 %v735_v10, %v739_v8  ;;  %v745_v5 = vadd.s32 %v739_v8, %v735_v10 }
  0xb5   :  { %v640_v27 = vshrl.u32 %v622_v28, %v638_v39  ;;  %v643_v52 = vadd.s32 127, %v642_v48  ;;  %v760_v30 = vmul.u32 %v756_v54, %v732_v35  ;;  %v761_v62 = vshll.u32 %v2079_v41, 16 }
  0xb6   :  { %v740_v2 = vshrl.u32 %v736_v13, 16  ;;  %v744_v31 = vsel %vm743_vm15, 1, %v1639_v4  ;;  %vm747_vm0 = vc.u32 %v745_v5, %v741_v32  ;;  %v763_v28 = vshll.u32 %v759_v19, 16 }
  0xb7   :  { %v641_v56 = vor.u32 %v640_v27, %v639_v37  ;;  %v644_v43 = vshll.u32 %v643_v52, 23  ;;  %v746_v14 = vadd.s32 %v744_v31, %v738_v61  ;;  %vm765_vm1 = vc.u32 %v757_v36, %v761_v62 }
  0xb8   :  { %v748_v39 = vsel %vm747_vm0, 1, %v1639_v4  ;;  %v766_v48 = vsel %vm765_vm1, 1, %v1639_v4  ;;  %vm177_vm2 = vcmp.eq.f32.partialorder %v1874_v21, 0.0  ;;  %v719_v27 = vsel %vm717_vm8, %v2025_v29, 2102212464 }
  0xb9   :  { %v645_v46 = vor.u32 4788187, %v644_v43  ;;  %v648_v58 = vcvt.s32.f32 %v641_v56  ;;  %v750_v52 = vadd.s32 %v748_v39, %v746_v14  ;;  %v767_v35 = vadd.s32 %v761_v62, %v757_v36 }
  0xba   :  { %v768_v54 = vadd.s32 %v766_v48, %v760_v30  ;;  %v358_v61 = vmul.f32 %v357_v42, %v2023_v3  ;;  %v504_v10 = vadd.f32 0.041655596, %v503_v59  ;;  %v742_v37 = vshrl.u32 %v737_v20, 16 }
  0xbb   :  { %v646_v13 = vand.u32 2147483647, %v645_v46  ;;  %v512_v8 = vmul.f32 %v511_v26, %v2048_v24  ;;  %v751_v32 = vadd.s32 %v750_v52, %v740_v2  ;;  %v762_v5 = vshrl.u32 %v2079_v41, 16 }
  0xbc   :  { %vm769_vm11 = vc.u32 %v767_v35, %v763_v28  ;;  %vm187_vm12 = vcmp.eq.f32.partialorder %v1892_v23, inf  ;;  %v718_v29 = vsel %vm714_vm7, %v698_v49, %v2010_v51  ;;  %v720_v42 = vsel %vm716_vm9, %v2012_v57, %v719_v27 }
  0xbd   :  { %v649_v56 = vmul.f32 %v648_v58, %v646_v13  ;;  %v770_v59 = vsel %vm769_vm11, 1, %v1639_v4  ;;  %v351_v20 = vmul.f32 %v350_v0, %v2023_v3  ;;  %vm2107_vm8 = vcmp.le.f32.partialorder %v528_v9, 0.7853982 }
  0xbe   :  { %v764_v26 = vshrl.u32 %v759_v19, 16  ;;  %v772_v36 = vadd.s32 %v770_v59, %v768_v54  ;;  %v359_v30 = vadd.f32 -0.16666654, %v358_v61  ;;  %v2111_v43 = vadd.s32 %v751_v32, %v742_v37 }
  0xbf   :  { %v650_v62 = vxor.u32 2147483648, %v649_v56  ;;  %v2113_v51 = vadd.s32 %v767_v35, %v763_v28  ;;  %v505_v57 = vmul.f32 %v504_v10, %v2048_v24  ;;  %v513_v49 = vadd.f32 -0.16666654, %v512_v8 }
  0xc0   :  { %v721_v4 = vsel %vm715_vm10, %v718_v29, %v720_v42  ;;  %v773_v0 = vadd.s32 %v772_v36, %v762_v5  ;;  %v176_v9 = vsel %vm175_vm13, %v1874_v21, %v2063_v25  ;;  %v186_v19 = vmul.f32 %v2069_v40, %v1892_v23 }
  0xc1   :  { %vm189_vm7 = vcmp.eq.f32.partialorder %v1892_v23, 0.0  ;;  %v344_v2 = vsub.s32 4, %v1791_v11  ;;  %v651_v31 = vsel %vm530_vm14, %v650_v62, %v649_v56  ;;  %v352_v14 = vadd.f32 -0.4999988, %v351_v20 }
  0xc2   :  { %v498_v1 = vsub.s32 4, %v1856_v63  ;;  %v654_v28 = vsel %vm2107_vm8, %v1775_v38, %v651_v31  ;;  %v774_v46 = vadd.s32 %v773_v0, %v764_v26  ;;  %v360_v25 = vmul.f32 %v359_v30, %v2023_v3 }
  0xc3   :  { %v656_v58 = vmul.f32 %v654_v28, %v654_v28  ;;  %v775_v40 = vmul.u32 %v2039_v45, %v721_v4  ;;  %vm777_vm9 = vc.u32 %v2111_v43, %v2113_v51  ;;  %v197_v39 = vmul.f32 %v1925_v18, %v196_v60 }
  0xc4   :  { %v506_v48 = vadd.f32 -0.4999988, %v505_v57  ;;  %v514_v27 = vmul.f32 %v513_v49, %v2048_v24  ;;  %v778_v52 = vadd.s32 1, %v774_v46  ;;  %v2144_v35 = vsel %vm177_vm2, %v178_v44, %v176_v9 }
  0xc5   :  { %v345_v45 = vsel %vm222_vm3, %v344_v2, %v1791_v11  ;;  %v657_v54 = vmul.f32 -0.001358992, %v656_v58  ;;  %v664_v61 = vmul.f32 -0.00019511016, %v656_v58  ;;  %v353_v34 = vmul.f32 %v352_v14, %v2023_v3 }
  0xc6   :  { %v499_v18 = vsel %vm376_vm5, %v498_v1, %v1856_v63  ;;  %v652_v60 = vsub.s32 4, %v2003_v47  ;;  %v779_v10 = vsel %vm777_vm9, %v778_v52, %v774_v46  ;;  %vm199_vm10 = vcmp.eq.f32.partialorder %v1900_v33, inf }
  0xc7   :  { %v361_v21 = vadd.f32 1.0, %v360_v25  ;;  %v658_v44 = vadd.f32 0.041655596, %v657_v54  ;;  %v665_v13 = vadd.f32 0.008332121, %v664_v61  ;;  %v780_v37 = vadd.s32 %v779_v10, %v775_v40 }
  0xc8   :  { %v188_v11 = vsel %vm187_vm12, %v1892_v23, %v186_v19  ;;  %v198_v8 = vmul.f32 %v197_v39, %v1900_v33  ;;  %v507_v3 = vmul.f32 %v506_v48, %v2048_v24  ;;  %v515_v32 = vadd.f32 1.0, %v514_v27 }
  0xc9   :  { %v347_v63 = vsel %vm1964_vm4, 0, %v345_v45  ;;  %v659_v5 = vmul.f32 %v658_v44, %v656_v58  ;;  %v666_v56 = vmul.f32 %v665_v13, %v656_v58  ;;  %v781_v29 = vadd.s32 536870912, %v780_v37 }
  0xca   :  { %vm201_vm3 = vcmp.eq.f32.partialorder %v1900_v33, 0.0  ;;  %v2163_v42 = vadd.f32 1.0, %v353_v34  ;;  %v364_v59 = vand.u32 3, %v347_v63  ;;  %v501_v20 = vsel %vm1991_vm6, 0, %v499_v18 }
  0xcb   :  { %v653_v26 = vsel %vm530_vm14, %v652_v60, %v2003_v47  ;;  %v2171_v24 = vmul.f32 %v361_v21, %v2001_v22  ;;  %v660_v6 = vadd.f32 -0.4999988, %v659_v5  ;;  %v667_v36 = vadd.f32 -0.16666654, %v666_v56 }
  0xcc   :  { %v2173_v30 = vshrl.u32 %v781_v29, 30  ;;  %v2300_v62 = vand.u32 2147483648, %v1892_v23  ;;  %v2181_v49 = vadd.f32 1.0, %v507_v3  ;;  %v2184_v15 = vmul.f32 %v515_v32, %v2031_v50 }
  0xcd   :  { %v518_v4 = vand.u32 3, %v501_v20  ;;  %v655_v22 = vsel %vm2107_vm8, 0, %v653_v26  ;;  %v661_v47 = vmul.f32 %v660_v6, %v656_v58  ;;  %v668_v0 = vmul.f32 %v667_v36, %v656_v58 }
  0xce   :  { %v2179_v57 = vsel %vm189_vm7, %v2300_v62, %v188_v11  ;;  %v783_v9 = vshll.u32 %v2173_v30, 30  ;;  %vm366_vm4 = vcmp.eq.s32.totalorder %v364_v59, 0  ;;  %vm369_vm5 = vcmp.eq.s32.totalorder %v364_v59, 2 }
  0xcf   :  { %v370_v19 = vxor.u32 2147483648, %v2163_v42  ;;  %v672_v23 = vand.u32 3, %v655_v22  ;;  %v367_v2 = vxor.u32 2147483648, %v2171_v24  ;;  %v2191_v31 = vadd.f32 1.0, %v661_v47 }
  0xd0   :  { %v669_v14 = vadd.f32 1.0, %v668_v0  ;;  %v784_v50 = vsub.s32 %v780_v37, %v783_v9  ;;  %vm520_vm6 = vcmp.eq.s32.totalorder %v518_v4, 0  ;;  %v521_v1 = vxor.u32 2147483648, %v2184_v15 }
  0xd1   :  { %vm523_vm13 = vcmp.eq.s32.totalorder %v518_v4, 2  ;;  %v524_v41 = vxor.u32 2147483648, %v2181_v49  ;;  %v678_v25 = vxor.u32 2147483648, %v2191_v31  ;;  %v200_v40 = vsel %vm199_vm10, %v1900_v33, %v198_v8 }
  0xd2   :  { %v2195_v46 = vmul.f32 %v669_v14, %v654_v28  ;;  %vm785_vm14 = vcmp.lt.s32.totalorder %v784_v50, 0  ;;  %v786_v58 = vsub.s32 0, %v784_v50  ;;  %vm365_vm15 = vcmp.lt.s32.totalorder %v364_v59, 2 }
  0xd3   :  { %vm674_vm0 = vcmp.eq.s32.totalorder %v672_v23, 0  ;;  %vm677_vm1 = vcmp.eq.s32.totalorder %v672_v23, 2  ;;  %v368_v39 = vsel %vm366_vm4, %v2163_v42, %v367_v2  ;;  %v371_v48 = vsel %vm369_vm5, %v370_v19, %v2171_v24 }
  0xd4   :  { %v675_v28 = vxor.u32 2147483648, %v2195_v46  ;;  %v787_v27 = vsel %vm785_vm14, %v786_v58, %v784_v50  ;;  %vm519_vm2 = vcmp.lt.s32.totalorder %v518_v4, 2  ;;  %v522_v52 = vsel %vm520_vm6, %v2181_v49, %v521_v1 }
  0xd5   :  { %v525_v45 = vsel %vm523_vm13, %v524_v41, %v2184_v15  ;;  %v788_v54 = vclz %v787_v27  ;;  %v2301_v61 = vand.u32 2147483648, %v1900_v33  ;;  %vm673_vm11 = vcmp.lt.s32.totalorder %v672_v23, 2 }
  0xd6   :  { %v676_v18 = vsel %vm674_vm0, %v2191_v31, %v675_v28  ;;  %v679_v60 = vsel %vm677_vm1, %v678_v25, %v2195_v46  ;;  %vm363_vm12 = vweird.f32 %v1677_v16  ;;  %v372_v10 = vsel %vm365_vm15, %v368_v39, %v371_v48  ;;  %v1480_v39 = vld [vmem:[#allocation4] sm:$0xff] }
  0xd7   :  { %v2214_v34 = vsel %vm201_vm3, %v2301_v61, %v200_v40  ;;  %vm517_vm8 = vweird.f32 %v1679_v17  ;;  %v1537_v21 = vadd.s32 4294967294, %v788_v54  ;;  %v526_v44 = vsel %vm519_vm2, %v522_v52, %v525_v45  ;;  %v1481_v54 = vld [vmem:[#allocation4 + $0x8] sm:$0xff]  ;;  %v1482_v17 = vld [vmem:[#allocation4 + $0x10] sm:$0xff] }
  0xd8   :  { %v992_v33 = vadd.s32 3, %v347_v63  ;;  %v1147_v13 = vadd.s32 3, %v501_v20  ;;  %v1302_v37 = vadd.s32 3, %v655_v22  ;;  %vm671_vm7 = vweird.f32 %v1775_v38 }
  0xd9   :  { %v680_v11 = vsel %vm673_vm11, %v676_v18, %v679_v60  ;;  %v776_v8 = vadd.s32 %v2113_v51, %v2111_v43  ;;  %vm1538_vm9 = vcmp.lt.s32.totalorder %v1537_v21, 0  ;;  %v373_v3 = vsel %vm363_vm12, nan, %v372_v10 }
  0xda   :  { %v791_v32 = vsel %vm1538_vm9, 0, %v1537_v21  ;;  %v993_v5 = vand.u32 3, %v992_v33  ;;  %v1148_v56 = vand.u32 3, %v1147_v13  ;;  %v527_v29 = vsel %vm517_vm8, nan, %v526_v44 }
  0xdb   :  { %v792_v59 = vsub.s32 32, %v791_v32  ;;  %v793_v63 = vshll.u32 %v784_v50, %v791_v32  ;;  %v796_v20 = vsub.s32 4294967266, %v791_v32  ;;  %v681_v26 = vsel %vm671_vm7, nan, %v680_v11 }
  0xdc   :  { %vm995_vm10 = vcmp.eq.s32.totalorder %v993_v5, 0  ;;  %vm998_vm3 = vcmp.eq.s32.totalorder %v993_v5, 2  ;;  %v1303_v6 = vand.u32 3, %v1302_v37  ;;  %vm994_vm4 = vcmp.lt.s32.totalorder %v993_v5, 2 }
  0xdd   :  { %v794_v43 = vshrl.u32 %v776_v8, %v792_v59  ;;  %v797_v51 = vadd.s32 127, %v796_v20  ;;  %v997_v36 = vsel %vm995_vm10, %v2163_v42, %v367_v2  ;;  %v1000_v62 = vsel %vm998_vm3, %v370_v19, %v2171_v24 }
  0xde   :  { %vm1149_vm5 = vcmp.lt.s32.totalorder %v1148_v56, 2  ;;  %vm1150_vm6 = vcmp.eq.s32.totalorder %v1148_v56, 0  ;;  %vm1153_vm13 = vcmp.eq.s32.totalorder %v1148_v56, 2  ;;  %v836_v47 = vmul.f32 %v373_v3, %v2144_v35 }
  0xdf   :  { %v795_v4 = vor.u32 %v794_v43, %v793_v63  ;;  %v798_v22 = vshll.u32 %v797_v51, 23  ;;  %v837_v0 = vmul.f32 %v527_v29, %v2179_v57  ;;  %v838_v9 = vmul.f32 %v681_v26, %v2214_v34 }
  0xe0   :  { %v1001_v23 = vsel %vm994_vm4, %v997_v36, %v1000_v62  ;;  %v1152_v14 = vsel %vm1150_vm6, %v2181_v49, %v521_v1  ;;  %v1155_v50 = vsel %vm1153_vm13, %v524_v41, %v2184_v15  ;;  %vm684_vm14 = vcmp.lt.s32.totalorder %v1906_v7, 0 }
  0xe1   :  { %v799_v42 = vor.u32 4788187, %v798_v22  ;;  %v802_v24 = vcvt.s32.f32 %v795_v4  ;;  %v840_v19 = vmul.f32 0.15, %v836_v47  ;;  %v841_v2 = vmul.f32 0.15, %v837_v0 }
  0xe2   :  { %v1002_v58 = vsel %vm363_vm12, nan, %v1001_v23  ;;  %v1156_v40 = vsel %vm1149_vm5, %v1152_v14, %v1155_v50  ;;  %vm1304_vm15 = vcmp.lt.s32.totalorder %v1303_v6, 2  ;;  %vm1305_vm0 = vcmp.eq.s32.totalorder %v1303_v6, 0 }
  0xe3   :  { %v800_v48 = vand.u32 2147483647, %v799_v42  ;;  %v1157_v27 = vsel %vm517_vm8, nan, %v1156_v40  ;;  %vm1308_vm1 = vcmp.eq.s32.totalorder %v1303_v6, 2  ;;  %v842_v49 = vmul.f32 0.15, %v838_v9 }
  0xe4   :  { %v1307_v15 = vsel %vm1305_vm0, %v2191_v31, %v675_v28  ;;  %v1310_v16 = vsel %vm1308_vm1, %v678_v25, %v2195_v46  ;;  %v1468_v1 = vmul.f32 %v1002_v58, %v2144_v35  ;;  %v1469_v45 = vmul.f32 %v1157_v27, %v2179_v57  ;;  %v1484_v46 = vld [vmem:[#allocation4 + $0x20] sm:$0xff]  ;;  %v1485_v25 = vld [vmem:[#allocation4 + $0x28] sm:$0xff] }
  0xe5   :  { %v803_v41 = vmul.f32 %v802_v24, %v800_v48  ;;  %v1311_v52 = vsel %vm1304_vm15, %v1307_v15, %v1310_v16  ;;  %v1488_v61 = vadd.f32 %v1480_v39, %v840_v19  ;;  %v206_v18 = vmul.f32 %v1986_v12, %v2016_v53  ;;  %v1486_v53 = vld [vmem:[#allocation4 + $0x30] sm:$0xff] }
  0xe6   :  { %v2302_v60 = vand.u32 2147483647, %v1906_v7  ;;  %v806_v31 = vsub.s32 4, %v2173_v30  ;;  %v1312_v35 = vsel %vm671_vm7, nan, %v1311_v52  ;;  %v1472_v21 = vmul.f32 0.15, %v1468_v1 }
  0xe7   :  { %v804_v57 = vxor.u32 2147483648, %v803_v41  ;;  %v1470_v10 = vmul.f32 %v1312_v35, %v2214_v34  ;;  %v1473_v44 = vmul.f32 0.15, %v1469_v45  ;;  %1492 = vst [vmem:[#allocation7] sm:$0xff] %v1488_v61  ;;  %v1489_v33 = vadd.f32 %v1481_v54, %v841_v2  ;;  %v1483_v45 = vld [vmem:[#allocation4 + $0x18] sm:$0xff] }
  0xe8   :  { %vm2259_vm2 = vcmp.le.f32.partialorder %v2302_v60, 0.7853982  ;;  %v1490_v13 = vadd.f32 %v1482_v17, %v842_v49  ;;  %v1496_v8 = vadd.f32 %v1484_v46, %v1472_v21  ;;  %v207_v32 = vmul.f32 0.5, %v206_v18 }
  0xe9   :  { %v805_v37 = vsel %vm684_vm14, %v804_v57, %v803_v41  ;;  %v1474_v11 = vmul.f32 0.15, %v1470_v10  ;;  %v1497_v3 = vadd.f32 %v1485_v25, %v1473_v44  ;;  %v807_v38 = vsel %vm684_vm14, %v806_v31, %v2173_v30  ;;  %1493 = vst [vmem:[#allocation7 + $0x8] sm:$0xff] %v1489_v33 }
  0xea   :  { %v808_v34 = vsel %vm2259_vm2, %v1906_v7, %v805_v37  ;;  %1494 = vst [vmem:[#allocation7 + $0x10] sm:$0xff] %v1490_v13  ;;  %v809_v29 = vsel %vm2259_vm2, 0, %v807_v38  ;;  %v208_v20 = vsub.f32 1.5, %v207_v32  ;;  %vm211_vm11 = vcmp.eq.f32.partialorder %v1946_v55, inf }
  0xeb   :  { %v810_v5 = vmul.f32 %v808_v34, %v808_v34  ;;  %v1498_v56 = vadd.f32 %v1486_v53, %v1474_v11  ;;  %1500 = vst [vmem:[#allocation7 + $0x20] sm:$0xff] %v1496_v8  ;;  %v1457_v30 = vadd.s32 3, %v809_v29  ;;  %v826_v22 = vand.u32 3, %v809_v29 }
  0xec   :  { %1501 = vst [vmem:[#allocation7 + $0x28] sm:$0xff] %v1497_v3  ;;  %v209_v36 = vmul.f32 %v1986_v12, %v208_v20  ;;  %vm213_vm7 = vcmp.eq.f32.partialorder %v1946_v55, 0.0  ;;  %v214_v42 = vand.u32 2147483648, %v1946_v55  ;;  %vm825_vm5 = vweird.f32 %v1906_v7 }
  0xed   :  { %v811_v59 = vmul.f32 -0.001358992, %v810_v5  ;;  %v818_v63 = vmul.f32 -0.00019511016, %v810_v5  ;;  %1502 = vst [vmem:[#allocation7 + $0x30] sm:$0xff] %v1498_v56  ;;  %v1458_v47 = vand.u32 3, %v1457_v30 }
  0xee   :  { %v210_v23 = vmul.f32 %v209_v36, %v1946_v55  ;;  %vm831_vm12 = vcmp.eq.s32.totalorder %v826_v22, 2  ;;  %vm827_vm9 = vcmp.lt.s32.totalorder %v826_v22, 2  ;;  %vm828_vm10 = vcmp.eq.s32.totalorder %v826_v22, 0 }
  0xef   :  { %v812_v26 = vadd.f32 0.041655596, %v811_v59  ;;  %v819_v6 = vadd.f32 0.008332121, %v818_v63  ;;  %vm1463_vm8 = vcmp.eq.s32.totalorder %v1458_v47, 2  ;;  %vm1460_vm3 = vcmp.eq.s32.totalorder %v1458_v47, 0 }
  0xf0   :  { %v212_v19 = vsel %vm211_vm11, %v1946_v55, %v210_v23  ;;  %vm1459_vm4 = vcmp.lt.s32.totalorder %v1458_v47, 2  ;;  %v1487_v55 = vld [vmem:[#allocation4 + $0x38] sm:$0xff] }
  0xf1   :  { %v813_v43 = vmul.f32 %v812_v26, %v810_v5  ;;  %v820_v51 = vmul.f32 %v819_v6, %v810_v5  ;;  %v215_v39 = vsel %vm213_vm7, %v214_v42, %v212_v19 }
  0xf3   :  { %v814_v62 = vadd.f32 -0.4999988, %v813_v43  ;;  %v821_v4 = vadd.f32 -0.16666654, %v820_v51 }
  0xf5   :  { %v815_v0 = vmul.f32 %v814_v62, %v810_v5  ;;  %v822_v9 = vmul.f32 %v821_v4, %v810_v5 }
  0xf7   :  { %v816_v14 = vadd.f32 1.0, %v815_v0  ;;  %v823_v50 = vadd.f32 1.0, %v822_v9 }
  0xf9   :  { %v824_v24 = vmul.f32 %v823_v50, %v808_v34  ;;  %v832_v12 = vxor.u32 2147483648, %v816_v14 }
  0xfb   :  { %v829_v2 = vxor.u32 2147483648, %v824_v24  ;;  %v833_v58 = vsel %vm831_vm12, %v832_v12, %v824_v24  ;;  %v1465_v40 = vsel %vm1463_vm8, %v832_v12, %v824_v24 }
  0xfd   :  { %v830_v48 = vsel %vm828_vm10, %v816_v14, %v829_v2  ;;  %v1462_v27 = vsel %vm1460_vm3, %v816_v14, %v829_v2 }
  0xfe   :  { %v834_v49 = vsel %vm827_vm9, %v830_v48, %v833_v58  ;;  %v1466_v15 = vsel %vm1459_vm4, %v1462_v27, %v1465_v40 }
  0xff   :  { %v835_v16 = vsel %vm825_vm5, nan, %v834_v49  ;;  %v1467_v1 = vsel %vm825_vm5, nan, %v1466_v15 }
 0x100   :  { %v839_v41 = vmul.f32 %v835_v16, %v215_v39  ;;  %v1471_v52 = vmul.f32 %v1467_v1, %v215_v39 }
 0x102   :  { %v843_v54 = vmul.f32 0.15, %v839_v41  ;;  %v1475_v17 = vmul.f32 0.15, %v1471_v52 }
 0x104   :  { %v1491_v7 = vadd.f32 %v1483_v45, %v843_v54  ;;  %v1499_v61 = vadd.f32 %v1487_v55, %v1475_v17 }
 0x106   :  { %1495 = vst [vmem:[#allocation7 + $0x18] sm:$0xff] %v1491_v7 }
 0x107   :  { %1503 = vst [vmem:[#allocation7 + $0x38] sm:$0xff] %v1499_v61 }
 0x108   :  { %1516 = dma.vmem_to_hbm [thread:$0]  %s1509_s23, 1024, %s1511_s26, [#allocation6], %s1631_s14, %s1631_s14, %s1632_s15  }
 0x109   :  { %1628 = dma.done.wait [#allocation6], 1024  }
 0x10a   :  { %1629 = vsyncadd [#allocation6], 4294966272 }
 0x10b   :  { %1521 = vsyncpa [#allocation5], 1 }
 0x10c   :  { %1522 = vsyncpa [#allocation6], 1 }

</bundles_post_ra>
